<compile_context>
chip_gen: v5e
topology: v5e:2x2
jax: 0.10.0
libtpu: 0.0.40
codegen_flags: <defaults>
</compile_context>

<pallas_src>
import functools

import jax
import jax.numpy as jnp
from jax.experimental import pallas as pl
from jax.experimental.pallas import tpu as pltpu


def _round_up(x, m):
    return ((x + m - 1) // m) * m


def _tile_and_pad(dim, max_tile, align):
    """Pick (tile, padded_dim).  Small dims use a single full-extent block (legal
    regardless of alignment, zero padding); larger dims use the biggest aligned
    tile that divides them, falling back to padding only when unavoidable."""
    if dim <= max_tile:
        return dim, dim
    t0 = (max_tile // align) * align
    t = t0
    while t >= align:
        if dim % t == 0:
            return t, dim
        t -= align
    return t0, _round_up(dim, t0)


def _mosaic_params(dim_sem, est_vmem_bytes=None):
    kwargs = {"dimension_semantics": dim_sem}
    if est_vmem_bytes is not None:
        # Explicit scoped-VMEM limit: 2x margin over the working-set estimate,
        # clamped to [32 MiB, 48 MiB] to stay below v7x's 64 MiB physical VMEM.
        kwargs["vmem_limit_bytes"] = int(
            min(48 * 2**20, max(32 * 2**20, 2 * est_vmem_bytes)))
    return pltpu.CompilerParams(**kwargs)


# ----------------------------------------------------------------------------
# Tiled matmul kernel (+bias, optional fused GELU) — used for every linear.
# ----------------------------------------------------------------------------

def _matmul_kernel(x_ref, w_ref, b_ref, o_ref, acc_ref, *, activation):
    @pl.when(pl.program_id(2) == 0)
    def _():
        acc_ref[...] = jnp.zeros_like(acc_ref)

    # bf16 MXU operands, f32 accumulation.
    acc_ref[...] += jnp.dot(
        x_ref[...].astype(jnp.bfloat16),
        w_ref[...].astype(jnp.bfloat16),
        preferred_element_type=jnp.float32,
    )

    @pl.when(pl.program_id(2) == pl.num_programs(2) - 1)
    def _():
        y = acc_ref[...] + b_ref[...].astype(jnp.float32)
        if activation == "gelu":
            # TODO(synk): PyTorch nn.GELU defaults to exact erf; tanh approx here.
            y = jax.nn.gelu(y, approximate=True)
        o_ref[...] = y.astype(o_ref.dtype)


def linear_pallas(x2d, w, b, activation=None, out_dtype=jnp.bfloat16):
    """x2d: (B, K) @ w: (K, F) + b: (F,) -> (B, F), optional fused GELU."""
    B, K = x2d.shape
    F = w.shape[1]
    # Tiles sized for the 2x256x256 MXUs on v6e/v7x; small dims collapse to a
    # single full-extent block, so no activation padding when already aligned.
    tm, Bp = _tile_and_pad(B, 256, 8)
    tk, Kp = _tile_and_pad(K, 512, 128)
    tn, Fp = _tile_and_pad(F, 256, 128)

    xp = x2d if (Bp == B and Kp == K) else jnp.pad(x2d, ((0, Bp - B), (0, Kp - K)))
    wp = w if (Kp == K and Fp == F) else jnp.pad(w, ((0, Kp - K), (0, Fp - F)))
    bp = (b if Fp == F else jnp.pad(b, (0, Fp - F))).reshape(1, Fp)

    est = (2 * (tm * tk * xp.dtype.itemsize + tk * tn * wp.dtype.itemsize
                + tn * 4 + tm * tn * jnp.dtype(out_dtype).itemsize)
           + tm * tn * 4)

    kernel = functools.partial(_matmul_kernel, activation=activation)
    out = pl.pallas_call(
        kernel,
        out_shape=jax.ShapeDtypeStruct((Bp, Fp), out_dtype),
        grid=(Bp // tm, Fp // tn, Kp // tk),
        in_specs=[
            pl.BlockSpec((tm, tk), lambda i, j, k: (i, k)),
            pl.BlockSpec((tk, tn), lambda i, j, k: (k, j)),
            pl.BlockSpec((1, tn), lambda i, j, k: (0, j)),
        ],
        out_specs=pl.BlockSpec((tm, tn), lambda i, j, k: (i, j)),
        scratch_shapes=[pltpu.VMEM((tm, tn), jnp.float32)],
        compiler_params=_mosaic_params(("parallel", "parallel", "arbitrary"), est),
    )(xp, wp, bp)
    if Bp != B or Fp != F:
        out = out[:B, :F]
    return out


def linear3(x3, w, b, activation=None, out_dtype=jnp.bfloat16):
    N, S, D = x3.shape
    return linear_pallas(x3.reshape(N * S, D), w, b, activation,
                         out_dtype=out_dtype).reshape(N, S, -1)


# ----------------------------------------------------------------------------
# Layer norm (row-tiled) and fused residual-add + layer norm.
# ----------------------------------------------------------------------------

def _ln_math(x, g, b):
    mean = jnp.mean(x, axis=-1, keepdims=True)
    var = jnp.mean(jnp.square(x - mean), axis=-1, keepdims=True)
    return (x - mean) * jax.lax.rsqrt(var + 1e-5) * g + b


def _layernorm_kernel(x_ref, g_ref, b_ref, o_ref):
    o_ref[...] = _ln_math(x_ref[...].astype(jnp.float32),
                          g_ref[...].astype(jnp.float32),
                          b_ref[...].astype(jnp.float32)).astype(o_ref.dtype)


def _add_layernorm_kernel(x_ref, r_ref, g_ref, b_ref, o_ref):
    x = x_ref[...].astype(jnp.float32) + r_ref[...].astype(jnp.float32)
    o_ref[...] = _ln_math(x, g_ref[...].astype(jnp.float32),
                          b_ref[...].astype(jnp.float32)).astype(o_ref.dtype)


def _rowwise_ln_call(kernel, row_inputs, gamma, beta, out_dtype=jnp.bfloat16):
    R, D = row_inputs[0].shape
    tm, Rp = _tile_and_pad(R, 1024, 8)   # memory-bound: large row tiles
    padded = [t if Rp == R else jnp.pad(t, ((0, Rp - R), (0, 0)))
              for t in row_inputs]
    in_specs = [pl.BlockSpec((tm, D), lambda i: (i, 0)) for _ in row_inputs]
    in_specs += [pl.BlockSpec((1, D), lambda i: (0, 0)),
                 pl.BlockSpec((1, D), lambda i: (0, 0))]
    out = pl.pallas_call(
        kernel,
        out_shape=jax.ShapeDtypeStruct((Rp, D), out_dtype),
        grid=(Rp // tm,),
        in_specs=in_specs,
        out_specs=pl.BlockSpec((tm, D), lambda i: (i, 0)),
        compiler_params=_mosaic_params(("parallel",)),
    )(*padded, gamma.reshape(1, D), beta.reshape(1, D))
    return out[:R] if Rp != R else out


def layernorm3(x3, gamma, beta, out_dtype=jnp.bfloat16):
    N, S, D = x3.shape
    out = _rowwise_ln_call(_layernorm_kernel, [x3.reshape(N * S, D)],
                           gamma, beta, out_dtype)
    return out.reshape(N, S, D)


def add_layernorm3(x3, res3, gamma, beta, out_dtype=jnp.bfloat16):
    """LayerNorm(x + res), fused in a single kernel (one HBM round trip)."""
    N, S, D = x3.shape
    out = _rowwise_ln_call(_add_layernorm_kernel,
                           [x3.reshape(N * S, D), res3.reshape(N * S, D)],
                           gamma, beta, out_dtype)
    return out.reshape(N, S, D)


# ----------------------------------------------------------------------------
# Flash-style blocked multi-head self-attention.
#   grid = (N*H, q-tiles, kv-tiles); kv axis is "arbitrary" with m/l/acc
#   scratch, so VMEM stays O(tile) and never materializes an (H, S, S) tensor.
# ----------------------------------------------------------------------------

def _flash_attn_kernel(q_ref, k_ref, v_ref, o_ref, m_sc, l_sc, acc_sc,
                       *, scale, kv_len, tkv, needs_mask):
    ki = pl.program_id(2)

    @pl.when(ki == 0)
    def _():
        m_sc[...] = jnp.full_like(m_sc, -jnp.inf)
        l_sc[...] = jnp.zeros_like(l_sc)
        acc_sc[...] = jnp.zeros_like(acc_sc)

    q = q_ref[0].astype(jnp.bfloat16)                      # (tq, Dh)
    k = k_ref[0].astype(jnp.bfloat16)                      # (tkv, Dh)
    v = v_ref[0].astype(jnp.bfloat16)                      # (tkv, Dh)

    s = jax.lax.dot_general(q, k, (((1,), (1,)), ((), ())),
                            preferred_element_type=jnp.float32) * scale
    if needs_mask:
        kv_pos = ki * tkv + jax.lax.broadcasted_iota(jnp.int32, s.shape, 1)
        s = jnp.where(kv_pos < kv_len, s, -1e30)

    m_new = jnp.maximum(m_sc[...], jnp.max(s, axis=-1, keepdims=True))
    alpha = jnp.exp(m_sc[...] - m_new)
    p = jnp.exp(s - m_new)
    l_sc[...] = alpha * l_sc[...] + jnp.sum(p, axis=-1, keepdims=True)
    acc_sc[...] = alpha * acc_sc[...] + jnp.dot(
        p.astype(jnp.bfloat16), v, preferred_element_type=jnp.float32)
    m_sc[...] = m_new

    @pl.when(ki == pl.num_programs(2) - 1)
    def _():
        o_ref[0] = (acc_sc[...] * pl.reciprocal(l_sc[...], approx=True)
                    ).astype(o_ref.dtype)


def attention_flash(q, k, v, out_dtype=jnp.bfloat16):
    """q, k, v: (N*H, S, Dh) -> softmax(QK^T / sqrt(Dh)) V, shape (N*H, S, Dh)."""
    NH, S, Dh = q.shape
    if S <= 128:
        tq = tkv = S
        Sp = S
    else:
        tq = tkv = 128
        Sp = _round_up(S, 128)
    needs_mask = Sp != S
    if needs_mask:
        pad = ((0, 0), (0, Sp - S), (0, 0))
        q, k, v = jnp.pad(q, pad), jnp.pad(k, pad), jnp.pad(v, pad)

    kernel = functools.partial(_flash_attn_kernel, scale=1.0 / (Dh ** 0.5),
                               kv_len=S, tkv=tkv, needs_mask=needs_mask)
    q_spec = pl.BlockSpec((1, tq, Dh), lambda nh, qi, ki: (nh, qi, 0))
    kv_spec = pl.BlockSpec((1, tkv, Dh), lambda nh, qi, ki: (nh, ki, 0))
    est = (2 * (tq + 2 * tkv) * Dh * q.dtype.itemsize
           + 2 * tq * Dh * jnp.dtype(out_dtype).itemsize
           + tq * (Dh + 2) * 4)
    out = pl.pallas_call(
        kernel,
        out_shape=jax.ShapeDtypeStruct((NH, Sp, Dh), out_dtype),
        grid=(NH, Sp // tq, Sp // tkv),
        in_specs=[q_spec, kv_spec, kv_spec],
        out_specs=pl.BlockSpec((1, tq, Dh), lambda nh, qi, ki: (nh, qi, 0)),
        scratch_shapes=[pltpu.VMEM((tq, 1), jnp.float32),
                        pltpu.VMEM((tq, 1), jnp.float32),
                        pltpu.VMEM((tq, Dh), jnp.float32)],
        compiler_params=_mosaic_params(("parallel", "parallel", "arbitrary"), est),
    )(q, k, v)
    return out[:, :S] if needs_mask else out


# ----------------------------------------------------------------------------
# Strided Conv1d + GELU feature-extractor kernel (no HBM im2col).
# ----------------------------------------------------------------------------

def _conv_gelu_kernel(x_ref, w_ref, b_ref, o_ref, *, taps, out_len):
    # x_ref: (1, T2, stride*Cin) — time pre-folded by stride, so each tap is a
    # contiguous slice; the k-tap unrolled accumulation stays in VMEM.
    x = x_ref[0].astype(jnp.bfloat16)                      # (T2, stride*Cin)
    acc = jnp.zeros((out_len, w_ref.shape[-1]), jnp.float32)
    for p in range(taps):
        acc = acc + jnp.dot(x[p:p + out_len, :],
                            w_ref[p].astype(jnp.bfloat16),
                            preferred_element_type=jnp.float32)
    y = jax.nn.gelu(acc + b_ref[...].astype(jnp.float32), approximate=True)
    o_ref[0] = y.astype(o_ref.dtype)


def conv1d_gelu_pallas(x, w, b, stride, out_dtype=jnp.bfloat16):
    """x: (N, T, Cin), w: (k, Cin, Cout), b: (Cout,). Valid strided conv + GELU."""
    N, T, Cin = x.shape
    k, _, Cout = w.shape
    assert k % stride == 0
    S = (T - k) // stride + 1
    taps = k // stride
    T2 = T // stride
    # Free reshape: fold `stride` consecutive time steps into the channel dim.
    x_r = x[:, : T2 * stride, :].reshape(N, T2, stride * Cin)
    w_r = w.reshape(taps, stride * Cin, Cout)

    # TODO(synk): for long audio, tile the time axis with a (taps-1)-row halo.
    kernel = functools.partial(_conv_gelu_kernel, taps=taps, out_len=S)
    return pl.pallas_call(
        kernel,
        out_shape=jax.ShapeDtypeStruct((N, S, Cout), out_dtype),
        grid=(N,),
        in_specs=[
            pl.BlockSpec((1, T2, stride * Cin), lambda i: (i, 0, 0)),
            pl.BlockSpec((taps, stride * Cin, Cout), lambda i: (0, 0, 0)),
            pl.BlockSpec((1, Cout), lambda i: (0, 0)),
        ],
        out_specs=pl.BlockSpec((1, S, Cout), lambda i: (i, 0, 0)),
        compiler_params=_mosaic_params(("parallel",)),
    )(x_r, w_r, b.reshape(1, Cout))


# ----------------------------------------------------------------------------
# Cosine-similarity contrastive logits (candidates padded to sublane only).
# ----------------------------------------------------------------------------

def _cosine_logits_kernel(s_ref, c_ref, o_ref, *, inv_temp):
    s = s_ref[...].astype(jnp.float32)                         # (tr, F)
    c = c_ref[...].astype(jnp.float32)                         # (tr, Lp, F)
    dots = jnp.sum(c * s[:, None, :], axis=-1)                 # (tr, Lp)
    s_norm = jnp.sqrt(jnp.sum(s * s, axis=-1, keepdims=True))  # (tr, 1)
    c_norm = jnp.sqrt(jnp.sum(c * c, axis=-1))                 # (tr, Lp)
    denom = jnp.maximum(s_norm * c_norm, 1e-8)
    o_ref[...] = (dots / denom * inv_temp).astype(o_ref.dtype)


def cosine_logits_pallas(seqs, candidates, logit_temp):
    """seqs: (N, S, F), candidates: (N, S, L, F) -> cosine logits (N, S, L)/temp."""
    N, S, F = seqs.shape
    L = candidates.shape[2]
    R = N * S
    Lp = _round_up(L, 8)           # sublane pad only; masked store on the tiny
    tr, Rp = _tile_and_pad(R, 256, 8)   # L-wide output is negligible.

    s2 = seqs.reshape(R, F)
    c3 = candidates.reshape(R, L, F)
    if Rp != R or Lp != L:
        s2 = jnp.pad(s2, ((0, Rp - R), (0, 0)))
        c3 = jnp.pad(c3, ((0, Rp - R), (0, Lp - L), (0, 0)))

    est = 2 * (tr * F * 4 + tr * Lp * F * 4 + tr * Lp * 4)
    kernel = functools.partial(_cosine_logits_kernel, inv_temp=1.0 / logit_temp)
    out = pl.pallas_call(
        kernel,
        out_shape=jax.ShapeDtypeStruct((Rp, Lp), jnp.float32),
        grid=(Rp // tr,),
        in_specs=[
            pl.BlockSpec((tr, F), lambda i: (i, 0)),
            pl.BlockSpec((tr, Lp, F), lambda i: (i, 0, 0)),
        ],
        out_specs=pl.BlockSpec((tr, Lp), lambda i: (i, 0)),
        compiler_params=_mosaic_params(("parallel",), est),
    )(s2, c3)
    return out[:R, :L].reshape(N, S, L)


# ----------------------------------------------------------------------------
# Model building blocks (glue around the Pallas kernels)
# ----------------------------------------------------------------------------

def encoder_layer(x, p, num_heads):
    N, S, M = x.shape
    Dh = M // num_heads

    # Fused QKV projection: one matmul instead of three.
    qkv = linear3(x, p["w_qkv"], p["b_qkv"])                 # (N, S, 3M) bf16
    q, k, v = jnp.split(qkv, 3, axis=-1)

    def to_heads(t):
        # (N, S, M) -> (N*H, S, Dh).  Dh (< 128) is not lane-aligned, so head
        # slicing cannot legally be a last-dim BlockSpec; do it in XLA.
        return (t.reshape(N, S, num_heads, Dh)
                 .transpose(0, 2, 1, 3)
                 .reshape(N * num_heads, S, Dh))

    o = attention_flash(to_heads(q), to_heads(k), to_heads(v))
    o = o.reshape(N, num_heads, S, Dh).transpose(0, 2, 1, 3).reshape(N, S, M)
    o = linear3(o, p["wo"], p["bo"])
    x = add_layernorm3(x, o, p["ln1_g"], p["ln1_b"])         # fused residual + LN

    h = linear3(x, p["w1"], p["b1"], activation="gelu")
    h = linear3(h, p["w2"], p["b2"])
    x = add_layernorm3(x, h, p["ln2_g"], p["ln2_b"])         # fused residual + LN
    return x


def make_temporal_mask(key, batch_size, seq_len, num_masked):
    """Deterministic rectangular temporal mask: exactly num_masked positions/row."""
    keys = jax.random.split(key, batch_size)
    idx_rows = []
    for i in range(batch_size):
        perm = jax.random.permutation(keys[i], seq_len)
        idx_rows.append(jnp.sort(perm[:num_masked]))
    idx = jnp.stack(idx_rows)                                       # (N, S_msk)
    mask = jnp.zeros((batch_size, seq_len), dtype=bool)
    mask = mask.at[jnp.arange(batch_size)[:, None], idx].set(True)  # (N, S_enc)
    return mask, idx


def extract_masked_elements(seqs, mask_idx):
    """seqs: (N, S_enc, D), mask_idx: (N, S_msk) -> (N, S_msk, D)."""
    N = seqs.shape[0]
    return seqs[jnp.arange(N)[:, None], mask_idx]


def quantize(targets, p, num_groups, num_vars):
    """Gumbel VQ in eval mode: hard argmax per group, codebook lookup."""
    N, S, Fd = targets.shape
    logits = linear_pallas(targets.reshape(N * S, Fd), p["q_wp"], p["q_bp"],
                           out_dtype=jnp.float32)
    logits = logits.reshape(N * S, num_groups, num_vars)
    idx = jnp.argmax(logits, axis=-1)                               # (N*S, G)
    codebook = p["q_codebook"]                                      # (G, V, D_g)
    sel = codebook[jnp.arange(num_groups)[None, :], idx]            # (N*S, G, D_g)
    return sel.reshape(N, S, num_groups * codebook.shape[-1])


def sample_distractors(targets, num_distractors, key):
    """Mirror of Wav2Vec2Model._sample_distractors."""
    batch_size, seq_len, d = targets.shape
    flat = targets.reshape(-1, d)
    indices = jnp.repeat(jnp.arange(seq_len), num_distractors)      # (S*K,)
    rand = jax.random.randint(key, (batch_size, seq_len * num_distractors),
                              0, seq_len - 1)
    rand = jnp.where(rand >= indices[None, :], rand + 1, rand)
    rand = rand + jnp.arange(batch_size)[:, None] * seq_len
    distractors = flat[rand.reshape(-1)]
    return distractors.reshape(batch_size, seq_len, num_distractors, d)


# ----------------------------------------------------------------------------
# Full forward pass (Wav2Vec2Model.forward)
# ----------------------------------------------------------------------------

def wav2vec2_forward(params, seqs, cfg, mask_key, distractor_key):
    N, T = seqs.shape

    # --- encoder frontend: conv feature extractor ---
    x = seqs[..., None]                                             # (N, T, 1)
    # First conv has Cin=1 (contraction width = 2): a Pallas MXU dot would be
    # >98% idle, so this degenerate layer stays in plain XLA (per review).
    x = jax.lax.conv_general_dilated(
        x, params["conv1_w"], window_strides=(2,), padding="VALID",
        dimension_numbers=("NWC", "WIO", "NWC"))
    x = jax.nn.gelu(x + params["conv1_b"], approximate=True).astype(jnp.bfloat16)
    # Second conv is wide (stride*Cin = 128 contraction) -> Pallas conv kernel.
    x = conv1d_gelu_pallas(x, params["conv2_w"], params["conv2_b"], stride=2)
    features = layernorm3(x, params["fe_ln_g"], params["fe_ln_b"])  # (N,S_enc,feat)
    raw_features = features
    targets_pre = features                                          # targets = seqs.clone()

    # TODO(synk): Wav2Vec2Frontend positional conv encoder (pos_encoder) omitted.
    ctx = linear3(features, params["post_proj_w"], params["post_proj_b"])

    # --- masker ---
    S_enc = ctx.shape[1]
    temporal_mask, mask_idx = make_temporal_mask(mask_key, N, S_enc, cfg["num_masked"])
    ctx = jnp.where(temporal_mask[..., None],
                    params["mask_emb"].astype(ctx.dtype)[None, None, :], ctx)
    targets = extract_masked_elements(targets_pre, mask_idx)        # (N, S_msk, feat)

    # --- encoder (context network) ---
    for layer_p in params["layers"]:
        ctx = encoder_layer(ctx, layer_p, cfg["num_heads"])
    encoder_output = ctx                                            # (N, S_enc, M)

    # --- quantize_and_contrast ---
    masked_ctx = extract_masked_elements(encoder_output, mask_idx)  # (N, S_msk, M)
    proj_seqs = linear3(masked_ctx, params["final_proj_w"], params["final_proj_b"],
                        out_dtype=jnp.float32)

    quantized = quantize(targets, params, cfg["num_groups"], cfg["num_vars"])
    proj_targets = linear3(quantized, params["final_tproj_w"], params["final_tproj_b"],
                           out_dtype=jnp.float32)

    distractors = sample_distractors(proj_targets, cfg["num_distractors"], distractor_key)
    candidates = jnp.concatenate([proj_targets[:, :, None, :], distractors], axis=2)

    logits = cosine_logits_pallas(proj_seqs, candidates, cfg["logit_temp"])
    distractor_is_target = jnp.all(proj_targets[:, :, None, :] == distractors, axis=-1)
    logits = logits.at[:, :, 1:].set(
        jnp.where(distractor_is_target, -jnp.inf, logits[:, :, 1:]))

    return {
        "logits": logits,                         # (N, S_msk, 1 + num_distractors)
        "quantized_targets": proj_targets,        # (N, S_msk, final_dim)
        "temporal_mask": temporal_mask,           # (N, S_enc)
        "encoder_output": encoder_output,         # (N, S_enc, M)
        "raw_features": raw_features,             # (N, S_enc, feat)
    }


# ----------------------------------------------------------------------------
# Deterministic parameter init (synthetic weights)
# ----------------------------------------------------------------------------

def init_params(key, cfg):
    c1 = cfg["conv1_dim"]
    feat, M, ffn = cfg["feature_dim"], cfg["model_dim"], cfg["ffn_dim"]
    fin = cfg["final_dim"]
    G, V = cfg["num_groups"], cfg["num_vars"]
    Dg = cfg["quantizer_out_dim"] // G

    def nrm(k, shape, scale=0.05):
        return scale * jax.random.normal(k, shape, jnp.float32)

    keys = iter(jax.random.split(key, 64))
    p = {
        "conv1_w": nrm(next(keys), (4, 1, c1)), "conv1_b": jnp.zeros((c1,), jnp.float32),
        "conv2_w": nrm(next(keys), (4, c1, feat)), "conv2_b": jnp.zeros((feat,), jnp.float32),
        "fe_ln_g": jnp.ones((feat,), jnp.float32), "fe_ln_b": jnp.zeros((feat,), jnp.float32),
        "post_proj_w": nrm(next(keys), (feat, M)), "post_proj_b": jnp.zeros((M,), jnp.float32),
        "mask_emb": nrm(next(keys), (M,)),
        "q_wp": nrm(next(keys), (feat, G * V)), "q_bp": jnp.zeros((G * V,), jnp.float32),
        "q_codebook": nrm(next(keys), (G, V, Dg)),
        "final_proj_w": nrm(next(keys), (M, fin)), "final_proj_b": jnp.zeros((fin,), jnp.float32),
        "final_tproj_w": nrm(next(keys), (cfg["quantizer_out_dim"], fin)),
        "final_tproj_b": jnp.zeros((fin,), jnp.float32),
        "layers": [],
    }
    for _ in range(cfg["num_layers"]):
        lp = {
            "w_qkv": nrm(next(keys), (M, 3 * M)), "b_qkv": jnp.zeros((3 * M,), jnp.float32),
            "wo": nrm(next(keys), (M, M)), "bo": jnp.zeros((M,), jnp.float32),
            "ln1_g": jnp.ones((M,), jnp.float32), "ln1_b": jnp.zeros((M,), jnp.float32),
            "w1": nrm(next(keys), (M, ffn)), "b1": jnp.zeros((ffn,), jnp.float32),
            "w2": nrm(next(keys), (ffn, M)), "b2": jnp.zeros((M,), jnp.float32),
            "ln2_g": jnp.ones((M,), jnp.float32), "ln2_b": jnp.zeros((M,), jnp.float32),
        }
        p["layers"].append(lp)
    return p


# ----------------------------------------------------------------------------
# Main
# ----------------------------------------------------------------------------

if __name__ == "__main__":
    cfg = {
        "conv1_dim": 64,
        "feature_dim": 64,
        "model_dim": 128,
        "ffn_dim": 256,
        "final_dim": 64,
        "num_layers": 2,
        "num_heads": 4,
        "num_masked": 8,          # S_msk
        "num_groups": 2,
        "num_vars": 8,
        "quantizer_out_dim": 64,
        "num_distractors": 4,
        "logit_temp": 0.1,
    }

    key = jax.random.PRNGKey(0)
    k_in, k_mask, k_dist = jax.random.split(key, 3)

    # raw waveform: (N, T) -> after two (k=4, s=2) convs: S_enc = 32
    seqs = jax.random.normal(k_in, (2, 134), jnp.float32)

    params = init_params(jax.random.PRNGKey(42), cfg)

    out = wav2vec2_forward(params, seqs, cfg, k_mask, k_dist)
    out = jax.tree_util.tree_map(jax.block_until_ready, out)

    assert out["logits"].shape == (2, cfg["num_masked"], 1 + cfg["num_distractors"])
    assert out["quantized_targets"].shape == (2, cfg["num_masked"], cfg["final_dim"])
    assert out["encoder_output"].shape == (2, 32, cfg["model_dim"])
    assert out["temporal_mask"].shape == (2, 32)
    assert bool(jnp.all(jnp.isfinite(out["encoder_output"].astype(jnp.float32))))

    print("KERNEL_OK")
</pallas_src>

<mosaic_0001>
module attributes {stable_mosaic.version = 11 : i64} {
  func.func @_conv_gelu_kernel(%arg0: i32, %arg1: memref<1x33x128xbf16, #tpu.memory_space<vmem>>, %arg2: memref<2x128x64xf32, #tpu.memory_space<vmem>>, %arg3: memref<1x64xf32, #tpu.memory_space<vmem>>, %arg4: memref<1x32x64xbf16, #tpu.memory_space<vmem>>) attributes {dimension_semantics = [#tpu.dimension_semantics<parallel>], iteration_bounds = array<i64: 2>, scalar_prefetch = 0 : i64, scratch_operands = 0 : i64, tpu.core_type = #tpu.core_type<tc>, window_params = [{transform_indices = @transform_0, window_bounds = array<i64: 1, 33, 128>}, {pipeline_mode = #tpu.pipeline_mode<synchronous>, transform_indices = @transform_1, window_bounds = array<i64: 2, 128, 64>}, {pipeline_mode = #tpu.pipeline_mode<synchronous>, transform_indices = @transform_2, window_bounds = array<i64: 1, 64>}, {transform_indices = @transform_3, window_bounds = array<i64: 1, 32, 64>}]} {
    %c0 = arith.constant 0 : index
    %c0_0 = arith.constant 0 : index
    %c0_1 = arith.constant 0 : index
    %0 = vector.load %arg1[%c0, %c0_0, %c0_1] : memref<1x33x128xbf16, #tpu.memory_space<vmem>>, vector<1x33x128xbf16>
    %1 = vector.shape_cast %0 : vector<1x33x128xbf16> to vector<33x128xbf16>
    %cst = arith.constant 0.000000e+00 : f32
    %2 = vector.broadcast %cst : f32 to vector<32x64xf32>
    %3 = vector.extract_strided_slice %1 {offsets = [0, 0], sizes = [32, 128], strides = [1, 1]} : vector<33x128xbf16> to vector<32x128xbf16>
    %c0_2 = arith.constant 0 : index
    %c0_3 = arith.constant 0 : index
    %c0_4 = arith.constant 0 : index
    %4 = vector.load %arg2[%c0_2, %c0_3, %c0_4] : memref<2x128x64xf32, #tpu.memory_space<vmem>>, vector<1x128x64xf32>
    %5 = vector.shape_cast %4 : vector<1x128x64xf32> to vector<128x64xf32>
    %6 = arith.truncf %5 : vector<128x64xf32> to vector<128x64xbf16>
    %cst_5 = arith.constant dense<0.000000e+00> : vector<32x64xf32>
    %7 = tpu.matmul %3, %6, %cst_5 {dimension_numbers = #tpu.dot_dimension_numbers<[1], [0], [0], [1], [0, 0, 1, 1], [], []>} : vector<32x128xbf16>, vector<128x64xbf16>, vector<32x64xf32> -> vector<32x64xf32>
    %8 = arith.addf %2, %7 : vector<32x64xf32>
    %9 = vector.extract_strided_slice %1 {offsets = [1, 0], sizes = [32, 128], strides = [1, 1]} : vector<33x128xbf16> to vector<32x128xbf16>
    %c1 = arith.constant 1 : index
    %c0_6 = arith.constant 0 : index
    %c0_7 = arith.constant 0 : index
    %10 = vector.load %arg2[%c1, %c0_6, %c0_7] : memref<2x128x64xf32, #tpu.memory_space<vmem>>, vector<1x128x64xf32>
    %11 = vector.shape_cast %10 : vector<1x128x64xf32> to vector<128x64xf32>
    %12 = arith.truncf %11 : vector<128x64xf32> to vector<128x64xbf16>
    %cst_8 = arith.constant dense<0.000000e+00> : vector<32x64xf32>
    %13 = tpu.matmul %9, %12, %cst_8 {dimension_numbers = #tpu.dot_dimension_numbers<[1], [0], [0], [1], [0, 0, 1, 1], [], []>} : vector<32x128xbf16>, vector<128x64xbf16>, vector<32x64xf32> -> vector<32x64xf32>
    %14 = arith.addf %8, %13 : vector<32x64xf32>
    %c0_9 = arith.constant 0 : index
    %c0_10 = arith.constant 0 : index
    %15 = vector.load %arg3[%c0_9, %c0_10] : memref<1x64xf32, #tpu.memory_space<vmem>>, vector<1x64xf32>
    %16 = vector.broadcast %15 : vector<1x64xf32> to vector<32x64xf32>
    %17 = arith.addf %14, %16 : vector<32x64xf32>
    %18 = arith.mulf %17, %17 : vector<32x64xf32>
    %19 = arith.mulf %17, %18 : vector<32x64xf32>
    %cst_11 = arith.constant 4.471500e-02 : f32
    %20 = vector.broadcast %cst_11 : f32 to vector<32x64xf32>
    %21 = arith.mulf %20, %19 : vector<32x64xf32>
    %22 = arith.addf %17, %21 : vector<32x64xf32>
    %cst_12 = arith.constant 0.797884583 : f32
    %23 = vector.broadcast %cst_12 : f32 to vector<32x64xf32>
    %24 = arith.mulf %23, %22 : vector<32x64xf32>
    %25 = math.tanh %24 : vector<32x64xf32>
    %cst_13 = arith.constant 1.000000e+00 : f32
    %26 = vector.broadcast %cst_13 : f32 to vector<32x64xf32>
    %27 = arith.addf %26, %25 : vector<32x64xf32>
    %cst_14 = arith.constant 5.000000e-01 : f32
    %28 = vector.broadcast %cst_14 : f32 to vector<32x64xf32>
    %29 = arith.mulf %28, %27 : vector<32x64xf32>
    %30 = arith.mulf %17, %29 : vector<32x64xf32>
    %31 = arith.truncf %30 : vector<32x64xf32> to vector<32x64xbf16>
    %c0_15 = arith.constant 0 : index
    %c0_16 = arith.constant 0 : index
    %c0_17 = arith.constant 0 : index
    %32 = vector.load %arg4[%c0_15, %c0_16, %c0_17] : memref<1x32x64xbf16, #tpu.memory_space<vmem>>, vector<1x32x64xbf16>
    %33 = vector.shape_cast %32 : vector<1x32x64xbf16> to vector<32x64xbf16>
    %34 = vector.shape_cast %31 : vector<32x64xbf16> to vector<1x32x64xbf16>
    tpu.vector_store %arg4[%c0_15, %c0_16, %c0_17], %34 {strides = array<i32>} : memref<1x32x64xbf16, #tpu.memory_space<vmem>>, vector<1x32x64xbf16>,
    return
  }
  func.func @transform_0(%arg0: i32) -> (i32, i32, i32) {
    %c0_i32 = arith.constant 0 : i32
    %c0_i32_0 = arith.constant 0 : i32
    %c0_i32_1 = arith.constant 0 : i32
    return %arg0, %c0_i32, %c0_i32_0 : i32, i32, i32
  }
  func.func @transform_1(%arg0: i32) -> (i32, i32, i32) {
    %c0_i32 = arith.constant 0 : i32
    %c0_i32_0 = arith.constant 0 : i32
    %c0_i32_1 = arith.constant 0 : i32
    %c0_i32_2 = arith.constant 0 : i32
    return %c0_i32, %c0_i32_0, %c0_i32_1 : i32, i32, i32
  }
  func.func @transform_2(%arg0: i32) -> (i32, i32) {
    %c0_i32 = arith.constant 0 : i32
    %c0_i32_0 = arith.constant 0 : i32
    %c0_i32_1 = arith.constant 0 : i32
    return %c0_i32, %c0_i32_0 : i32, i32
  }
  func.func @transform_3(%arg0: i32) -> (i32, i32, i32) {
    %c0_i32 = arith.constant 0 : i32
    %c0_i32_0 = arith.constant 0 : i32
    %c0_i32_1 = arith.constant 0 : i32
    return %arg0, %c0_i32, %c0_i32_0 : i32, i32, i32
  }
}

</mosaic_0001>

<bundles_post_ra>
// kernel: tpu_custom_call.1
= control target key start
LH: loop header
LB: loop body
LE: loop exit
PB: predicated region body
PF: predicated region fallthrough
CT: control target
= control target key end

     0   :  { %8 = vsyncpa [#allocation3], 0  ;;  %s813_s0 = inlined_call_operand.vmem [shape: bf16[2,33,128], index: 0, kind: input, shape index: {}]   ;;  %s814_s1 = inlined_call_operand.vmem [shape: f32[2,128,64], index: 1, kind: input, shape index: {}]   ;;  %s815_s2 = inlined_call_operand.vmem [shape: f32[1,64], index: 2, kind: input, shape index: {}]   ;;  %s816_s3 = inlined_call_operand.hbm [shape: bf16[2,32,64], index: 3, kind: output, shape index: {}]  }
   0x1   :  { %10 = vsyncpa [#allocation3 + $0x1], 0  ;;  %s621_s12 = smov 0   ;;  %s623_s13 = smov 0  }
   0x2   :  { %s625_s14 = smov 0   ;;  %s627_s15 = smov 0  }
   0x3 LB: > { %s642_s16 = sadd.s32 4294967295, %s597_s15   ;;  %s430_s17 = sadd.s32 4294967294, %s597_s15   ;;  %s597_s15 = sphi %s627_s15, %s822_s15   ;;  %s593_s14 = sphi %s625_s14, %s821_s14   ;;  %s589_s13 = sphi %s623_s13, %s820_s13   ;;  %s585_s12 = sphi %s621_s12, %s819_s12  }
   0x4   : > { %s646_s18 = sadd.s32 1, %s597_s15   ;;  %s91_s19 = sadd.s32 1, %s593_s14 }
   0x5   : > { %s88_s20 = ssub.s32 %s597_s15, %s646_s18  ;;  %p101_p0 = scmp.ne.s32.totalorder %s593_s14, %s589_s13 }
   0x6   : > { %p89_p1 = scmp.eq.s32.totalorder %s88_s20, 0  ;;  %p102_p2 = scmp.eq.s32.totalorder %s642_s16, 1 }
   0x7   : > { %p107_p3 = scmp.ne.s32.totalorder %s589_s13, %s585_s12  ;;  %p108_p4 = scmp.eq.s32.totalorder %s430_s17, 1 }
   0x8   : > { %s657_s21 = scalar_select %p89_p1, %s593_s14, %s91_s19  }
   0x9   : > { %p659_p5 = por %p102_p2, %p101_p0  ;;  %p663_p6 = por %p108_p4, %p107_p3 }
   0xa   : > { %p433_p7 = scmp.ge.s32.totalorder %s597_s15, 1  ;;  %p140_p8 = scmp.lt.s32.totalorder %s597_s15, 3 }
   0xc   : > { %p141_p9 = pnand %p433_p7, %p140_p8 }
   0xd   : > { %p164_p10 = scmp.lt.s32.totalorder (!%p141_p9), %s642_s16, 1  ;;  %s161_s20 = sand.u32 (!%p141_p9), 1, %s589_s13  }
   0xe   : > { %144 = sbr.rel (%p141_p9) target bundleno = 227 (0xe3), region = 32  ;;  %s467_s26 = sshll.u32 (!%p141_p9), %s642_s16, 4 }
   0xf   : > { %s364_s29 = scalar_lea.hbm (!%p141_p9), %s816_s3, %s467_s26  ;;  %s555_s9 = scalar_lea.hbm (!%p141_p9), %s816_s3, 32 }
  0x13   : > { %v450_v0 = vld [vmem:[%s814_s1 + $0xf0] sm:$0xff]  ;;  %v451_v1 = vld [vmem:[%s814_s1 + $0xf8] sm:$0xff]  ;;  %v448_v5 = vld [vmem:[%s814_s1 + $0xe0] sm:$0xff]  ;;  %s165_s19 = scalar_select %p164_p10, %s642_s16, 1  ;;  %vm236_vm0 = vsmask.f32 7424 }
  0x14   : > { %v188_v2 = vld [vmem:[%s814_s1 + $0x70] sm:$0xff]  ;;  %v222_v3 = vpack.c.bf16 %v451_v1, %v450_v0  ;;  %v189_v4 = vld [vmem:[%s814_s1 + $0x78] sm:$0xff]  ;;  %v449_v6 = vld [vmem:[%s814_s1 + $0xe8] sm:$0xff]  ;;  %vm347_vm1 = vcmask 519168   ;;  %s353_s16 = scalar_lea.sflag [#allocation3], %s161_s20 }
  0x15   : > { %v197_v7 = vpack.c.bf16 %v189_v4, %v188_v2  ;;  %v186_v8 = vld [vmem:[%s814_s1 + $0x60] sm:$0xff]  ;;  %v187_v9 = vld [vmem:[%s814_s1 + $0x68] sm:$0xff]  ;;  %v221_v10 = vpack.c.bf16 %v449_v6, %v448_v5  ;;  %v446_v12 = vld [vmem:[%s814_s1 + $0xd0] sm:$0xff]  ;;  %s484_s4 = smul.u32 20, %s165_s19 }
  0x16   : > { %259 = vmatpush.bf16.msra.mxu0 %v222_v3  ;;  %468 = vmatpush.bf16.msra.mxu2 %v222_v3  ;;  %v196_v11 = vpack.c.bf16 %v187_v9, %v186_v8  ;;  %v447_v13 = vld [vmem:[%s814_s1 + $0xd8] sm:$0xff]  ;;  %v184_v14 = vld [vmem:[%s814_s1 + $0x50] sm:$0xff]  ;;  %v444_v18 = vld [vmem:[%s814_s1 + $0xc0] sm:$0xff] }
  0x17   : > { %280 = vmatpush.bf16.msra.mxu1 %v197_v7  ;;  %476 = vmatpush.bf16.msra.mxu3 %v197_v7  ;;  %v185_v15 = vld [vmem:[%s814_s1 + $0x58] sm:$0xff]  ;;  %v220_v16 = vpack.c.bf16 %v447_v13, %v446_v12  ;;  %v445_v19 = vld [vmem:[%s814_s1 + $0xc8] sm:$0xff]  ;;  %v182_v20 = vld [vmem:[%s814_s1 + $0x40] sm:$0xff]  ;;  %s168_s24 = scalar_lea.vmem %s813_s0, %s484_s4  ;;  %s367_s4 = sshll.u32 %s364_s29, 4  ;;  %s368_s4 = int_to_ptr.hbm [resolvable:$true] %s367_s4 }
  0x18   : > { %v195_v17 = vpack.c.bf16 %v185_v15, %v184_v14  ;;  %v183_v21 = vld [vmem:[%s814_s1 + $0x48] sm:$0xff]  ;;  %v219_v22 = vpack.c.bf16 %v445_v19, %v444_v18  ;;  %v442_v24 = vld [vmem:[%s814_s1 + $0xb0] sm:$0xff]  ;;  %v443_v25 = vld [vmem:[%s814_s1 + $0xb8] sm:$0xff]  ;;  %s549_s5 = sshra.s32 %s368_s4, 4  ;;  %s550_s5 = int_to_ptr.hbm [resolvable:$true] %s549_s5 }
  0x19   : > { %v194_v23 = vpack.c.bf16 %v183_v21, %v182_v20  ;;  %v173_v26 = vld [vmem:[%s168_s24 + $0x10] sm:$0x1]  ;;  %v181_v28 = vld [vmem:[%s814_s1 + $0x38] sm:$0xff]  ;;  %v218_v29 = vpack.c.bf16 %v443_v25, %v442_v24  ;;  %v465_v30 = vld [vmem:[%s168_s24] sm:$0xff]  ;;  %s551_s6 = scalar_lea.hbm %s550_s5, 16  ;;  %p556_p0 = scmp.lt.s32.totalorder %s550_s5, %s816_s3 }
  0x1a   : > { %260 = vmatpush.bf16.msra.mxu0 %v221_v10  ;;  %469 = vmatpush.bf16.msra.mxu2 %v221_v10  ;;  %v180_v27 = vld [vmem:[%s814_s1 + $0x30] sm:$0xff]  ;;  %v466_v31 = vld [vmem:[%s168_s24 + $0x8] sm:$0xff]  ;;  %v232_v32 = vunpack.c.l.b16 %v173_v26  ;;  %v440_v34 = vld [vmem:[%s814_s1 + $0xa0] sm:$0xff]  ;;  %v240_v41 = vshll.u32 %v465_v30, 16  ;;  %v238_v48 = vshrl.u32 %v465_v30, 16  ;;  %s434_s24 = sshll.u32 %s161_s20, 4  ;;  %p552_p11 = scmp.ne.s32.totalorder %s550_s5, %s551_s6 }
  0x1b   : > { %281 = vmatpush.bf16.msra.mxu1 %v196_v11  ;;  %477 = vmatpush.bf16.msra.mxu3 %v196_v11  ;;  %v193_v33 = vpack.c.bf16 %v181_v28, %v180_v27  ;;  %v441_v35 = vld [vmem:[%s814_s1 + $0xa8] sm:$0xff]  ;;  %v178_v36 = vld [vmem:[%s814_s1 + $0x20] sm:$0xff]  ;;  %v438_v39 = vld [vmem:[%s814_s1 + $0x90] sm:$0xff]  ;;  %v245_v42 = vshll.u32 %v466_v31, 16  ;;  %v249_v51 = vshrl.u32 %v466_v31, 16  ;;  %s163_s25 = scalar_lea.vmem [#allocation2], %s434_s24  ;;  %p557_p1 = scmp.lt.s32.totalorder %s555_s9, %s551_s6 }
  0x1c   : > { %v179_v37 = vld [vmem:[%s814_s1 + $0x28] sm:$0xff]  ;;  %v217_v38 = vpack.c.bf16 %v441_v35, %v440_v34  ;;  %v439_v40 = vld [vmem:[%s814_s1 + $0x98] sm:$0xff]  ;;  %v235_v43 = vpack.c.b16 %v232_v32, %v232_v32  ;;  %v176_v45 = vld [vmem:[%s814_s1 + $0x10] sm:$0xff]  ;;  %v242_v49 = vrot.slane %v240_v41, 1  ;;  %s365_s30 = sshll.u32 %s163_s25, 4  ;;  %p553_p12 = pnand %p552_p11, %p659_p5  ;;  %s366_s30 = int_to_ptr.vmem [resolvable:$true] %s365_s30 }
  0x1d   : > { %v192_v44 = vpack.c.bf16 %v179_v37, %v178_v36  ;;  %v177_v46 = vld [vmem:[%s814_s1 + $0x18] sm:$0xff]  ;;  %v216_v47 = vpack.c.bf16 %v439_v40, %v438_v39  ;;  %v247_v50 = vrot.slane %v245_v42, 1  ;;  %v436_v54 = vld [vmem:[%s814_s1 + $0x80] sm:$0xff]  ;;  %v437_v55 = vld [vmem:[%s814_s1 + $0x88] sm:$0xff]  ;;  %p558_p2 = por %p557_p1, %p556_p0 }
  0x1e   : > { %261 = vmatpush.bf16.msra.mxu0 %v220_v16  ;;  %470 = vmatpush.bf16.msra.mxu2 %v220_v16  ;;  %v253_v52 = vshll.u32 %v235_v43, 16  ;;  %v191_v53 = vpack.c.bf16 %v177_v46, %v176_v45  ;;  %v174_v56 = vld [vmem:[%s814_s1] sm:$0xff]  ;;  %v175_v57 = vld [vmem:[%s814_s1 + $0x8] sm:$0xff]  ;;  %v215_v58 = vpack.c.bf16 %v437_v55, %v436_v54  ;;  %v243_v59 = vor.u32 %v242_v49, %v238_v48  ;;  %p554_p13 = pneg %p553_p12 }
  0x1f   : > { %282 = vmatpush.bf16.msra.mxu1 %v195_v17  ;;  %478 = vmatpush.bf16.msra.mxu3 %v195_v17  ;;  %v251_v60 = vor.u32 %v249_v51, %v247_v50  ;;  %v190_v62 = vpack.c.bf16 %v175_v57, %v174_v56  ;;  %v526_v2 = vld [vmem:[%s815_s2] ss:$0 sm:$0xff] }
  0x20   : > { %v255_v61 = vrot.slane %v253_v52, 1  ;;  %v248_v63 = vsel %vm236_vm0, %v243_v59, %v247_v50  ;;  %p559_p3 = pnand %p558_p2, %p554_p13 }
  0x22   : > { %262 = vmatpush.bf16.msra.mxu0 %v219_v22  ;;  %471 = vmatpush.bf16.msra.mxu2 %v219_v22  ;;  %v256_v0 = vsel %vm236_vm0, %v251_v60, %v255_v61 }
  0x23   : > { %283 = vmatpush.bf16.msra.mxu1 %v194_v23  ;;  %479 = vmatpush.bf16.msra.mxu3 %v194_v23 }
  0x26   : > { %263 = vmatpush.bf16.msra.mxu0 %v218_v29  ;;  %472 = vmatpush.bf16.msra.mxu2 %v218_v29 }
  0x27   : > { %284 = vmatpush.bf16.msra.mxu1 %v193_v33  ;;  %480 = vmatpush.bf16.msra.mxu3 %v193_v33 }
  0x2a   : > { %264 = vmatpush.bf16.msra.mxu0 %v217_v38  ;;  %473 = vmatpush.bf16.msra.mxu2 %v217_v38 }
  0x2b   : > { %285 = vmatpush.bf16.msra.mxu1 %v192_v44  ;;  %481 = vmatpush.bf16.msra.mxu3 %v192_v44 }
  0x2e   : > { %265 = vmatpush.bf16.msra.mxu0 %v216_v47  ;;  %474 = vmatpush.bf16.msra.mxu2 %v216_v47 }
  0x2f   : > { %286 = vmatpush.bf16.msra.mxu1 %v191_v53  ;;  %482 = vmatpush.bf16.msra.mxu3 %v191_v53 }
  0x32   : > { %266 = vmatpush.bf16.msra.mxu0 %v215_v58  ;;  %475 = vmatpush.bf16.msra.mxu2 %v215_v58 }
  0x33   : > { %287 = vmatpush.bf16.msra.mxu1 %v190_v62  ;;  %483 = vmatpush.bf16.msra.mxu3 %v190_v62 }
  0x35   : > { %267 = vmatmul.bf16.vlgmr.msra.gmra.mxu0 %v248_v63  ;;  %272 = vmatmul.bf16.vlgmr.msra.gmra.mxu2 %v256_v0 }
  0x36   : > { %288 = vmatmul.bf16.vlgmr.msra.gmra.mxu1 %v465_v30  ;;  %293 = vmatmul.bf16.vlgmr.msra.gmra.mxu3 %v466_v31 }
  0xb2   : > { %v268_v1 = vpop.f32.mrf.mxu0 }
  0xb3   : > { %v289_v3 = vpop.f32.mrf.mxu1 }
  0xb4   : > { %v290_v4 = vadd.f32 %v289_v3, %v268_v1 }
  0xb6   : > { %v303_v5 = vadd.f32 %v526_v2, %v290_v4 }
  0xb8   : > { %v307_v6 = vmul.f32 %v303_v5, %v303_v5  ;;  %v273_v7 = vpop.f32.mrf.mxu2 }
  0xb9   : > { %v294_v8 = vpop.f32.mrf.mxu3 }
  0xba   : > { %v311_v9 = vmul.f32 %v307_v6, %v303_v5  ;;  %v295_v10 = vadd.f32 %v294_v8, %v273_v7  ;;  %v270_v11 = vpop.f32.mrf.mxu0 }
  0xbb   : > { %v291_v12 = vpop.f32.mrf.mxu1 }
  0xbc   : > { %v315_v13 = vmul.f32 0.044715, %v311_v9  ;;  %v305_v14 = vadd.f32 %v526_v2, %v295_v10  ;;  %v292_v15 = vadd.f32 %v291_v12, %v270_v11 }
  0xbe   : > { %v319_v16 = vadd.f32 %v315_v13, %v303_v5  ;;  %v309_v17 = vmul.f32 %v305_v14, %v305_v14  ;;  %v304_v18 = vadd.f32 %v526_v2, %v292_v15 }
  0xc0   : > { %v323_v19 = vmul.f32 0.7978846, %v319_v16  ;;  %v313_v20 = vmul.f32 %v309_v17, %v305_v14  ;;  %v308_v21 = vmul.f32 %v304_v18, %v304_v18  ;;  %v275_v22 = vpop.f32.mrf.mxu2 }
  0xc1   : > { %v296_v23 = vpop.f32.mrf.mxu3 }
  0xc2   : > { %527 = vtanh.f32 %v323_v19  ;;  %v317_v24 = vmul.f32 0.044715, %v313_v20  ;;  %v312_v25 = vmul.f32 %v308_v21, %v304_v18  ;;  %v297_v26 = vadd.f32 %v296_v23, %v275_v22 }
  0xc4   : > { %v321_v27 = vadd.f32 %v317_v24, %v305_v14  ;;  %v316_v28 = vmul.f32 0.044715, %v312_v25  ;;  %v306_v29 = vadd.f32 %v526_v2, %v297_v26 }
  0xc6   : > { %v325_v30 = vmul.f32 0.7978846, %v321_v27  ;;  %v320_v31 = vadd.f32 %v316_v28, %v304_v18  ;;  %v310_v32 = vmul.f32 %v306_v29, %v306_v29 }
  0xc8   : > { %v528_v33 = vpop.eup %527  ;;  %529 = vtanh.f32 %v325_v30  ;;  %v324_v34 = vmul.f32 0.7978846, %v320_v31  ;;  %v314_v35 = vmul.f32 %v310_v32, %v306_v29 }
  0xc9   : > { %v331_v36 = vadd.f32 1.0, %v528_v33 }
  0xca   : > { %531 = vtanh.f32 %v324_v34  ;;  %v318_v37 = vmul.f32 0.044715, %v314_v35 }
  0xcb   : > { %v335_v38 = vmul.f32 0.5, %v331_v36 }
  0xcc   : > { %v322_v39 = vadd.f32 %v318_v37, %v306_v29 }
  0xcd   : > { %v339_v40 = vmul.f32 %v335_v38, %v303_v5 }
  0xce   : > { %v530_v41 = vpop.eup %529  ;;  %v326_v42 = vmul.f32 0.7978846, %v322_v39 }
  0xcf   : > { %v343_v43 = vpack.c.bf16 %v339_v40, %v339_v40  ;;  %v333_v44 = vadd.f32 1.0, %v530_v41 }
  0xd0   : > { %v532_v45 = vpop.eup %531  ;;  %533 = vtanh.f32 %v326_v42 }
  0xd1   : > { %348 = vst.msk [vmem:[%s163_s25] sm:$0xf] %vm347_vm1, %v343_v43  ;;  %v337_v46 = vmul.f32 0.5, %v333_v44  ;;  %v332_v47 = vadd.f32 1.0, %v532_v45 }
  0xd3   : > { %v341_v48 = vmul.f32 %v337_v46, %v305_v14  ;;  %v336_v49 = vmul.f32 0.5, %v332_v47 }
  0xd5   : > { %v345_v50 = vpack.c.bf16 %v341_v48, %v341_v48  ;;  %v340_v51 = vmul.f32 %v336_v49, %v304_v18 }
  0xd6   : > { %v534_v52 = vpop.eup %533 }
  0xd7   : > { %350 = vst.msk [vmem:[%s163_s25 + $0x8] sm:$0xf] %vm347_vm1, %v345_v50  ;;  %v344_v53 = vpack.c.bf16 %v340_v51, %v340_v51  ;;  %v334_v54 = vadd.f32 1.0, %v534_v52 }
  0xd9   : > { %349 = vst.msk [vmem:[%s163_s25 + $0x4] sm:$0xf] %vm347_vm1, %v344_v53  ;;  %v338_v55 = vmul.f32 0.5, %v334_v54 }
  0xdb   : > { %v342_v56 = vmul.f32 %v338_v55, %v306_v29 }
  0xdd   : > { %v346_v57 = vpack.c.bf16 %v342_v56, %v342_v56 }
  0xdf   : > { %351 = vst.msk [vmem:[%s163_s25 + $0xc] sm:$0xf] %vm347_vm1, %v346_v57 }
  0xe0   : > { %562 = shalt.err (!%p559_p3)
}
  0xe1   : > { %s599_s17 = smov 64   ;;  %s600_s19 = smov 4  }
  0xe2   : > { %485 = dma.vmem_to_hbm [thread:$0]  (%p659_p5), %s366_s30, 256, %s368_s4, %s353_s16, %s599_s17, %s599_s17, %s600_s19  }
  0xe3 PF: > { %p491_p4 = scmp.ge.s32.totalorder %s597_s15, 2  ;;  %s382_s20 = sand.u32 1, %s585_s12  }
  0xe4   : > { %s383_s24 = scalar_lea.sflag [#allocation3], %s382_s20 }
  0xe5   : > { %p488_p7 = pnand %p491_p4, %p663_p6 }
  0xe7   : > { %p489_p8 = pneg %p488_p7 }
  0xe9   : > { %580 = dma.done.wait (%p489_p8), %s383_s24, 256  }
  0xea   : > { %582 = vsyncadd (%p489_p8), %s383_s24, 4294967040  ;;  %p13_p9 = scmp.ge.s32.totalorder %s646_s18, 4   ;;  %s819_s12 = smov %s589_s13 }
  0xeb   : > { %s820_s13 = smov %s593_s14  ;;  %s821_s14 = smov %s657_s21 }
  0xec   : > { %s822_s15 = smov %s646_s18  ;;  %15 = sbr.rel (!%p13_p9) target bundleno = 3 (0x3), region = 68 }
  0xf1   :  { %389 = vsyncpa [#allocation3], 1 }
  0xf2   :  { %391 = vsyncpa [#allocation3 + $0x1], 1 }

</bundles_post_ra>
